<compile_context>
chip_gen: v7x
topology: tpu7x:2x2x1
jax: 0.10.0
libtpu: 0.0.40
codegen_flags: <defaults>
</compile_context>

<pallas_src>
import math
import functools

import jax
import jax.numpy as jnp
from jax import lax
from jax.experimental import pallas as pl
from jax.experimental.pallas import tpu as pltpu

LOG10 = math.log(10.0)


def _loss_kernel(c_ref, yhat_ref, y_ref, mask_ref, out_ref, num_acc, cnt_acc,
                 *, n_coeffs: int, n_rows: int, n_cols: int,
                 tile_n: int, tile_d: int):
    """Grid = (col tiles [parallel], row tiles [arbitrary, reduction last])."""
    j = pl.program_id(0)  # column-tile index
    i = pl.program_id(1)  # row-tile index (reduction axis)

    @pl.when(i == 0)
    def _():
        num_acc[...] = jnp.zeros_like(num_acc)
        cnt_acc[...] = jnp.zeros_like(cnt_acc)

    yhat = yhat_ref[...].astype(jnp.float32)
    y = y_ref[...].astype(jnp.float32)
    mask = mask_ref[...].astype(jnp.float32)

    diff = jnp.abs(yhat - y)

    # Ragged tail tiles: zero contributions from rows/cols beyond (n_rows, n_cols).
    # These compares are only emitted when the tile does not divide the dimension
    # (static condition) and are essentially free on the VPU.
    valid = None
    if n_rows % tile_n != 0:
        rid = lax.broadcasted_iota(jnp.int32, (tile_n, tile_d), 0) + i * tile_n
        valid = rid < n_rows
    if n_cols % tile_d != 0:
        cid = lax.broadcasted_iota(jnp.int32, (tile_n, tile_d), 1) + j * tile_d
        cvalid = cid < n_cols
        valid = cvalid if valid is None else jnp.logical_and(valid, cvalid)
    if valid is not None:
        diff = jnp.where(valid, diff, 0.0)   # also kills NaN/Inf garbage reads
        mask = jnp.where(valid, mask, 0.0)

    # Horner evaluation of err = sum_k c_k * diff^k with folded constants
    # c_k = w[k-1] * LOG10^k / k!  (read as scalars from SMEM).
    acc = c_ref[n_coeffs - 1]
    for k in range(n_coeffs - 1, 0, -1):
        acc = c_ref[k - 1] + diff * acc
    err = diff * acc

    # Per-column partial reductions over the row (sublane) axis.
    num_acc[...] += jnp.sum(mask * err, axis=0, keepdims=True)
    cnt_acc[...] += jnp.sum(mask, axis=0, keepdims=True)

    @pl.when(i == pl.num_programs(1) - 1)
    def _():
        # clip(colsum, min=1) applied only after the FULL row reduction.
        out_ref[...] = num_acc[...] / jnp.maximum(cnt_acc[...], 1.0)


def _round_up(x: int, m: int) -> int:
    return ((x + m - 1) // m) * m


def _device_kind() -> str:
    try:
        return jax.devices()[0].device_kind.lower()
    except Exception:
        return ""


def _pick_tile(dim: int, granule: int, max_tile: int, min_tiles: int = 1) -> int:
    """Tile size for one axis.

    If the axis fits in one tile and no split is requested, use the full extent
    (always a legal block shape, no over-read).  Otherwise use a granule-multiple
    tile; the ragged tail tile is masked inside the kernel.
    """
    max_tile = _round_up(max_tile, granule)
    if min_tiles <= 1 and dim <= max_tile:
        return dim
    t = min(_round_up(pl.cdiv(dim, max(min_tiles, 1)), granule), max_tile)
    if t >= dim:        # cannot split this axis any further -> single full tile
        return dim
    return t


def evolutive_masked_series_loss(y_hat: jax.Array, y: jax.Array, mask: jax.Array,
                                 w: jax.Array,
                                 *,
                                 tile_n_max: int | None = None,
                                 tile_d_max: int = 512,
                                 min_col_tiles: int | None = None,
                                 vmem_limit_bytes: int | None = None) -> jax.Array:
    """Pallas-TPU implementation of EvolutiveMaskedSeriesLoss.forward.

    y_hat / y may be f32 or bf16; mask may be f32 / bf16 / int8 (0/1) — all are
    upcast to f32 inside the kernel, so narrower input dtypes directly reduce
    HBM traffic for this bandwidth-bound kernel.
    """
    assert y_hat.ndim == 2 and y_hat.shape == y.shape == mask.shape
    n_rows, n_cols = (int(s) for s in y_hat.shape)
    n_coeffs = int(w.shape[0])
    assert n_coeffs >= 1, "EvolutiveMaskedSeriesLoss needs at least one coefficient"

    kind = _device_kind()
    if tile_n_max is None:
        # 1024-row tiles on v6e/v7x (explicit vmem limit below); 512 elsewhere so
        # f32 tiles stay inside v5e's 16 MiB default scoped VMEM.
        tile_n_max = 1024 if ("v6" in kind or "v7" in kind) else 512
    if min_col_tiles is None:
        # Chips exposing 2 TensorCores to one program: keep >=2 tiles on the
        # 'parallel' column axis so both cores stream HBM.
        min_col_tiles = 2 if any(t in kind for t in ("v7", "v5p", "v4")) else 1
    if vmem_limit_bytes is None:
        if "v7" in kind:
            vmem_limit_bytes = 40 << 20   # v7x: only 64 MiB physical VMEM per TC
        elif "v6" in kind:
            vmem_limit_bytes = 64 << 20   # v6e: 128 MiB physical

    # Fold the k-dependent scalar constants on the host: c_k = w[k-1]*LOG10^k/k!
    scale = jnp.asarray([LOG10 ** k / math.factorial(k)
                         for k in range(1, n_coeffs + 1)], dtype=jnp.float32)
    c = w.astype(jnp.float32) * scale

    # Lane-dense tiles (column granule 128); row granule 32 so int8/bool masks
    # pack into full sublane tiles.  No padded copies of the inputs are made.
    tile_d = _pick_tile(n_cols, 128, tile_d_max, min_col_tiles)
    tile_n = _pick_tile(n_rows, 32, tile_n_max, 1)
    # TODO(synk): on 2-TC chips with D < 256 the column axis cannot be split;
    # a 2-way row split (two partial output rows combined in the wrapper) would
    # recover the second core for such shapes.

    grid = (pl.cdiv(n_cols, tile_d), pl.cdiv(n_rows, tile_n))  # (cols, rows)

    kernel = functools.partial(_loss_kernel, n_coeffs=n_coeffs,
                               n_rows=n_rows, n_cols=n_cols,
                               tile_n=tile_n, tile_d=tile_d)

    in_bytes = (y_hat.dtype.itemsize + y.dtype.itemsize + mask.dtype.itemsize)
    cost = pl.CostEstimate(
        flops=(2 * n_coeffs + 6) * n_rows * n_cols,
        transcendentals=0,
        bytes_accessed=n_rows * n_cols * in_bytes + 4 * n_cols)

    per_col = pl.pallas_call(
        kernel,
        out_shape=jax.ShapeDtypeStruct((1, n_cols), jnp.float32),
        grid_spec=pltpu.PrefetchScalarGridSpec(
            num_scalar_prefetch=1,  # coefficients -> SMEM before the grid runs
            grid=grid,
            in_specs=[
                pl.BlockSpec((tile_n, tile_d), lambda j, i, c_ref: (i, j)),  # y_hat
                pl.BlockSpec((tile_n, tile_d), lambda j, i, c_ref: (i, j)),  # y
                pl.BlockSpec((tile_n, tile_d), lambda j, i, c_ref: (i, j)),  # mask
            ],
            out_specs=pl.BlockSpec((1, tile_d), lambda j, i, c_ref: (0, j)),
            scratch_shapes=[
                pltpu.VMEM((1, tile_d), jnp.float32),  # num = sum_n mask*err
                pltpu.VMEM((1, tile_d), jnp.float32),  # cnt = sum_n mask
            ],
        ),
        compiler_params=pltpu.CompilerParams(
            dimension_semantics=("parallel", "arbitrary"),
            vmem_limit_bytes=vmem_limit_bytes),
        cost_estimate=cost,
    )(c, y_hat, y, mask)

    # per_col[0, d] = sum_n w_norm * err for column d; mean over TRUE columns.
    return jnp.mean(per_col)


def _reference_loss(y_hat, y, mask, w):
    """Pure-JAX replica of the PyTorch forward, for validation."""
    w_norm = mask / jnp.clip(jnp.sum(mask, axis=0), 1.0)
    diff = jnp.abs(y_hat - y)
    err = jnp.zeros_like(diff)
    logk = 1.0
    diffk = jnp.ones_like(diff)
    denomk = 1
    for k in range(1, w.shape[0] + 1):
        logk = logk * LOG10
        diffk = diffk * diff
        denomk = denomk * k
        err = err + w[k - 1] * logk * diffk / denomk
    return jnp.mean(jnp.sum(w_norm * err, axis=0))


if __name__ == "__main__":
    key = jax.random.PRNGKey(0)
    k1, k2, k3, k4, k5, k6 = jax.random.split(key, 6)

    # Deterministic synthetic EvolutiveCoefficients.get(epoch=1)
    w = jnp.array([1.0, 0.5, 0.25, 0.125], dtype=jnp.float32)

    # --- small single-tile case (f32 everything) ---
    N, D = 16, 32
    y_hat = jax.random.normal(k1, (N, D), dtype=jnp.float32)
    y = jax.random.normal(k2, (N, D), dtype=jnp.float32)
    mask = (jax.random.uniform(k3, (N, D)) > 0.3).astype(jnp.float32)

    loss = evolutive_masked_series_loss(y_hat, y, mask, w)
    jax.block_until_ready(loss)
    ref = _reference_loss(y_hat, y, mask, w)
    assert jnp.allclose(loss, ref, rtol=1e-4, atol=1e-6), (loss, ref)

    # --- multi-tile, ragged-edge case: int8 mask, an all-zero mask column,
    #     forced small tiles so both grid axes have ragged tails, and a 2-way
    #     column split (the dual-TensorCore path) ---
    N2, D2 = 300, 200
    y_hat2 = jax.random.normal(k4, (N2, D2), dtype=jnp.float32)
    y2 = jax.random.normal(k5, (N2, D2), dtype=jnp.float32)
    m2 = jax.random.uniform(k6, (N2, D2)) > 0.4
    m2 = m2.at[:, 0].set(False)                      # exercises clip(., 1)
    mask2 = m2.astype(jnp.int8)                      # narrow-dtype mask stream

    loss2 = evolutive_masked_series_loss(
        y_hat2, y2, mask2, w, tile_n_max=64, tile_d_max=128, min_col_tiles=2)
    jax.block_until_ready(loss2)
    ref2 = _reference_loss(y_hat2, y2, m2.astype(jnp.float32), w)
    assert jnp.allclose(loss2, ref2, rtol=1e-4, atol=1e-6), (loss2, ref2)

    # --- bf16 activations streamed narrow, upcast inside the kernel ---
    yh_bf, y_bf = y_hat2.astype(jnp.bfloat16), y2.astype(jnp.bfloat16)
    loss3 = evolutive_masked_series_loss(yh_bf, y_bf, mask2, w)
    jax.block_until_ready(loss3)
    ref3 = _reference_loss(yh_bf.astype(jnp.float32), y_bf.astype(jnp.float32),
                           m2.astype(jnp.float32), w)
    assert jnp.allclose(loss3, ref3, rtol=1e-4, atol=1e-6), (loss3, ref3)

    print("KERNEL_OK")
</pallas_src>

<mosaic_0001>
module attributes {stable_mosaic.version = 11 : i64} {
  func.func @_loss_kernel(%arg0: i32, %arg1: i32, %arg2: memref<4xf32, #tpu.memory_space<smem>>, %arg3: memref<16x32xf32, #tpu.memory_space<vmem>>, %arg4: memref<16x32xf32, #tpu.memory_space<vmem>>, %arg5: memref<16x32xf32, #tpu.memory_space<vmem>>, %arg6: memref<1x32xf32, #tpu.memory_space<vmem>>, %arg7: memref<1x32xf32, #tpu.memory_space<vmem>>, %arg8: memref<1x32xf32, #tpu.memory_space<vmem>>) attributes {dimension_semantics = [#tpu.dimension_semantics<parallel>, #tpu.dimension_semantics<arbitrary>], iteration_bounds = array<i64: 1, 1>, scalar_prefetch = 1 : i64, scratch_operands = 2 : i64, tpu.core_type = #tpu.core_type<tc>, window_params = [{transform_indices = @transform_0, window_bounds = array<i64: 16, 32>}, {transform_indices = @transform_1, window_bounds = array<i64: 16, 32>}, {transform_indices = @transform_2, window_bounds = array<i64: 16, 32>}, {transform_indices = @transform_3, window_bounds = array<i64: 1, 32>}]} {
    %c0_i32 = arith.constant 0 : i32
    %0 = arith.cmpi eq, %arg1, %c0_i32 : i32
    %1 = arith.extui %0 : i1 to i32
    %c0_i32_0 = arith.constant 0 : i32
    %2 = arith.cmpi ne, %1, %c0_i32_0 : i32
    scf.if %2 {
      %cst_18 = arith.constant 0.000000e+00 : f32
      %37 = vector.broadcast %cst_18 : f32 to vector<1x32xf32>
      %c0_19 = arith.constant 0 : index
      %c0_20 = arith.constant 0 : index
      %38 = vector.load %arg7[%c0_19, %c0_20] : memref<1x32xf32, #tpu.memory_space<vmem>>, vector<1x32xf32>
      tpu.vector_store %arg7[%c0_19, %c0_20], %37 {strides = array<i32>} : memref<1x32xf32, #tpu.memory_space<vmem>>, vector<1x32xf32>,
      %cst_21 = arith.constant 0.000000e+00 : f32
      %39 = vector.broadcast %cst_21 : f32 to vector<1x32xf32>
      %c0_22 = arith.constant 0 : index
      %c0_23 = arith.constant 0 : index
      %40 = vector.load %arg8[%c0_22, %c0_23] : memref<1x32xf32, #tpu.memory_space<vmem>>, vector<1x32xf32>
      tpu.vector_store %arg8[%c0_22, %c0_23], %39 {strides = array<i32>} : memref<1x32xf32, #tpu.memory_space<vmem>>, vector<1x32xf32>,
    } else {
    }
    %c0 = arith.constant 0 : index
    %c0_1 = arith.constant 0 : index
    %3 = vector.load %arg3[%c0, %c0_1] : memref<16x32xf32, #tpu.memory_space<vmem>>, vector<16x32xf32>
    %c0_2 = arith.constant 0 : index
    %c0_3 = arith.constant 0 : index
    %4 = vector.load %arg4[%c0_2, %c0_3] : memref<16x32xf32, #tpu.memory_space<vmem>>, vector<16x32xf32>
    %c0_4 = arith.constant 0 : index
    %c0_5 = arith.constant 0 : index
    %5 = vector.load %arg5[%c0_4, %c0_5] : memref<16x32xf32, #tpu.memory_space<vmem>>, vector<16x32xf32>
    %6 = arith.subf %3, %4 : vector<16x32xf32>
    %7 = math.absf %6 : vector<16x32xf32>
    %c3 = arith.constant 3 : index
    %8 = memref.load %arg2[%c3] : memref<4xf32, #tpu.memory_space<smem>>
    %c2 = arith.constant 2 : index
    %9 = memref.load %arg2[%c2] : memref<4xf32, #tpu.memory_space<smem>>
    %10 = vector.broadcast %8 : f32 to vector<16x32xf32>
    %11 = arith.mulf %7, %10 : vector<16x32xf32>
    %12 = vector.broadcast %9 : f32 to vector<16x32xf32>
    %13 = arith.addf %12, %11 : vector<16x32xf32>
    %c1 = arith.constant 1 : index
    %14 = memref.load %arg2[%c1] : memref<4xf32, #tpu.memory_space<smem>>
    %15 = arith.mulf %7, %13 : vector<16x32xf32>
    %16 = vector.broadcast %14 : f32 to vector<16x32xf32>
    %17 = arith.addf %16, %15 : vector<16x32xf32>
    %c0_6 = arith.constant 0 : index
    %18 = memref.load %arg2[%c0_6] : memref<4xf32, #tpu.memory_space<smem>>
    %19 = arith.mulf %7, %17 : vector<16x32xf32>
    %20 = vector.broadcast %18 : f32 to vector<16x32xf32>
    %21 = arith.addf %20, %19 : vector<16x32xf32>
    %22 = arith.mulf %7, %21 : vector<16x32xf32>
    %c0_7 = arith.constant 0 : index
    %c0_8 = arith.constant 0 : index
    %23 = vector.load %arg7[%c0_7, %c0_8] : memref<1x32xf32, #tpu.memory_space<vmem>>, vector<1x32xf32>
    %24 = arith.mulf %5, %22 : vector<16x32xf32>
    %cst = arith.constant dense<0.000000e+00> : vector<32xf32>
    %25 = vector.multi_reduction <add>, %24, %cst [0] : vector<16x32xf32> to vector<32xf32>
    %26 = vector.shape_cast %25 : vector<32xf32> to vector<1x32xf32>
    %27 = arith.addf %23, %26 : vector<1x32xf32>
    %c0_9 = arith.constant 0 : index
    %c0_10 = arith.constant 0 : index
    %28 = vector.load %arg7[%c0_9, %c0_10] : memref<1x32xf32, #tpu.memory_space<vmem>>, vector<1x32xf32>
    tpu.vector_store %arg7[%c0_9, %c0_10], %27 {strides = array<i32>} : memref<1x32xf32, #tpu.memory_space<vmem>>, vector<1x32xf32>,
    %c0_11 = arith.constant 0 : index
    %c0_12 = arith.constant 0 : index
    %29 = vector.load %arg8[%c0_11, %c0_12] : memref<1x32xf32, #tpu.memory_space<vmem>>, vector<1x32xf32>
    %cst_13 = arith.constant dense<0.000000e+00> : vector<32xf32>
    %30 = vector.multi_reduction <add>, %5, %cst_13 [0] : vector<16x32xf32> to vector<32xf32>
    %31 = vector.shape_cast %30 : vector<32xf32> to vector<1x32xf32>
    %32 = arith.addf %29, %31 : vector<1x32xf32>
    %c0_14 = arith.constant 0 : index
    %c0_15 = arith.constant 0 : index
    %33 = vector.load %arg8[%c0_14, %c0_15] : memref<1x32xf32, #tpu.memory_space<vmem>>, vector<1x32xf32>
    tpu.vector_store %arg8[%c0_14, %c0_15], %32 {strides = array<i32>} : memref<1x32xf32, #tpu.memory_space<vmem>>, vector<1x32xf32>,
    %c0_i32_16 = arith.constant 0 : i32
    %34 = arith.cmpi eq, %arg1, %c0_i32_16 : i32
    %35 = arith.extui %34 : i1 to i32
    %c0_i32_17 = arith.constant 0 : i32
    %36 = arith.cmpi ne, %35, %c0_i32_17 : i32
    scf.if %36 {
      %c0_18 = arith.constant 0 : index
      %c0_19 = arith.constant 0 : index
      %37 = vector.load %arg7[%c0_18, %c0_19] : memref<1x32xf32, #tpu.memory_space<vmem>>, vector<1x32xf32>
      %c0_20 = arith.constant 0 : index
      %c0_21 = arith.constant 0 : index
      %38 = vector.load %arg8[%c0_20, %c0_21] : memref<1x32xf32, #tpu.memory_space<vmem>>, vector<1x32xf32>
      %cst_22 = arith.constant 1.000000e+00 : f32
      %39 = vector.broadcast %cst_22 : f32 to vector<1x32xf32>
      %40 = arith.maximumf %38, %39 : vector<1x32xf32>
      %41 = arith.divf %37, %40 : vector<1x32xf32>
      %c0_23 = arith.constant 0 : index
      %c0_24 = arith.constant 0 : index
      %42 = vector.load %arg6[%c0_23, %c0_24] : memref<1x32xf32, #tpu.memory_space<vmem>>, vector<1x32xf32>
      tpu.vector_store %arg6[%c0_23, %c0_24], %41 {strides = array<i32>} : memref<1x32xf32, #tpu.memory_space<vmem>>, vector<1x32xf32>,
    } else {
    }
    return
  }
  func.func @transform_0(%arg0: i32, %arg1: i32, %arg2: memref<4xf32, #tpu.memory_space<smem>>) -> (i32, i32) {
    %c0_i32 = arith.constant 0 : i32
    return %arg1, %arg0 : i32, i32
  }
  func.func @transform_1(%arg0: i32, %arg1: i32, %arg2: memref<4xf32, #tpu.memory_space<smem>>) -> (i32, i32) {
    %c0_i32 = arith.constant 0 : i32
    return %arg1, %arg0 : i32, i32
  }
  func.func @transform_2(%arg0: i32, %arg1: i32, %arg2: memref<4xf32, #tpu.memory_space<smem>>) -> (i32, i32) {
    %c0_i32 = arith.constant 0 : i32
    return %arg1, %arg0 : i32, i32
  }
  func.func @transform_3(%arg0: i32, %arg1: i32, %arg2: memref<4xf32, #tpu.memory_space<smem>>) -> (i32, i32) {
    %c0_i32 = arith.constant 0 : i32
    %c0_i32_0 = arith.constant 0 : i32
    return %c0_i32, %arg0 : i32, i32
  }
}

</mosaic_0001>

<bundles_post_ra>
// kernel: tpu_custom_call.1
= control target key start
LH: loop header
LB: loop body
LE: loop exit
PB: predicated region body
PF: predicated region fallthrough
CT: control target
= control target key end

     0   :  { %s390_s0 = inlined_call_operand.hbm [shape: f32[4], index: 0, kind: input, shape index: {}]   ;;  %s391_s1 = inlined_call_operand.hbm [shape: f32[16,32], index: 1, kind: input, shape index: {}]   ;;  %s392_s2 = inlined_call_operand.hbm [shape: f32[16,32], index: 2, kind: input, shape index: {}]   ;;  %s393_s3 = inlined_call_operand.hbm [shape: f32[16,32], index: 3, kind: input, shape index: {}]   ;;  %s394_s4 = inlined_call_operand.hbm [shape: f32[1,32], index: 4, kind: output, shape index: {}]  }
   0x1   :  { %s166_s17 = scalar_lea.hbm %s390_s0, 16 }
   0x2   :  { %p167_p0 = scmp.ne.s32.totalorder %s390_s0, %s166_s17  ;;  %p170_p1 = scmp.lt.u32.totalorder %s166_s17, %s390_s0 }
   0x4   :  { %p172_p2 = pnand %p170_p1, %p167_p0 }
   0x6   :  { %175 = shalt.err (!%p172_p2)  }
   0x7   :  { %s272_s22 = smov [#allocation5]  }
   0x8   :  { %10 = dma.hbm_to_smem %s390_s0, 16, %s272_s22, [#allocation4] }
   0x9   :  { %264 = dma.done.wait [#allocation4], 16 }
   0xa   :  { %265 = vsyncadd [#allocation4], 4294967280 }
   0xb   :  { %12 = sfence }
   0xc   :  { %13 = vsyncpa [#allocation7], 0 }
   0xd   :  { %14 = vsyncpa [#allocation10], 0 }
   0xe   :  { %15 = vsyncpa [#allocation8], 0  ;;  %s273_s25 = smov [#allocation9]   ;;  %s274_s27 = smov [#allocation6]  }
   0xf   :  { %s33_s26 = sshll.u32 %s273_s25, 4  ;;  %s21_s28 = sshll.u32 %s274_s27, 4  ;;  %s34_s26 = int_to_ptr.vmem [resolvable:$true] %s33_s26  ;;  %s317_s28 = int_to_ptr.vmem [resolvable:$true] %s21_s28 }
  0x10   :  { %s176_s5 = scalar_lea.hbm %s392_s2, 256 }
  0x11   :  { %p177_p3 = scmp.ne.s32.totalorder %s392_s2, %s176_s5  ;;  %p180_p4 = scmp.lt.u32.totalorder %s176_s5, %s392_s2 }
  0x13   :  { %p182_p5 = pnand %p180_p4, %p177_p3 }
  0x15   :  { %185 = shalt.err (!%p182_p5)
}
  0x16   :  { %s186_s9 = scalar_lea.vmem %s34_s26, 256  ;;  %p191_p7 = scmp.lt.s32.totalorder %s34_s26, %s34_s26 }
  0x17   :  { %p187_p6 = scmp.ne.s32.totalorder %s34_s26, %s186_s9  ;;  %p192_p8 = scmp.lt.s32.totalorder %s186_s9, %s186_s9 }
  0x19   :  { %p193_p9 = por %p192_p8, %p191_p7 }
  0x1b   :  { %p194_p10 = pnand %p193_p9, %p187_p6 }
  0x1d   :  { %197 = shalt.err (!%p194_p10)
}
  0x1e   :  { %s275_s10 = smov 128   ;;  %s276_s11 = smov 8  }
  0x1f   :  { %39 = dma.hbm_to_vmem [thread:$0]  %s392_s2, 256, %s34_s26, [#allocation10], %s275_s10, %s275_s10, %s276_s11  }
  0x20   :  { %s198_s16 = scalar_lea.hbm %s391_s1, 256 }
  0x21   :  { %p199_p11 = scmp.ne.s32.totalorder %s391_s1, %s198_s16  ;;  %p202_p12 = scmp.lt.u32.totalorder %s198_s16, %s391_s1 }
  0x23   :  { %p204_p13 = pnand %p202_p12, %p199_p11 }
  0x25   :  { %207 = shalt.err (!%p204_p13)
}
  0x26   :  { %s208_s21 = scalar_lea.vmem %s317_s28, 256  ;;  %p213_p1 = scmp.lt.s32.totalorder %s317_s28, %s317_s28 }
  0x27   :  { %p209_p0 = scmp.ne.s32.totalorder %s317_s28, %s208_s21  ;;  %p214_p2 = scmp.lt.s32.totalorder %s208_s21, %s208_s21 }
  0x29   :  { %p215_p3 = por %p214_p2, %p213_p1 }
  0x2b   :  { %p216_p4 = pnand %p215_p3, %p209_p0 }
  0x2d   :  { %219 = shalt.err (!%p216_p4)
}
  0x2e   :  { %27 = dma.hbm_to_vmem [thread:$0]  %s391_s1, 256, %s317_s28, [#allocation7], %s275_s10, %s275_s10, %s276_s11  }
  0x2f   :  { %s277_s23 = smov [#allocation11]   ;;  %s220_s27 = scalar_lea.hbm %s393_s3, 256 }
  0x30   :  { %s45_s24 = sshll.u32 %s277_s23, 4  ;;  %p221_p5 = scmp.ne.s32.totalorder %s393_s3, %s220_s27  ;;  %s46_s24 = int_to_ptr.vmem [resolvable:$true] %s45_s24 }
  0x31   :  { %p224_p6 = scmp.lt.u32.totalorder %s220_s27, %s393_s3 }
  0x33   :  { %p226_p7 = pnand %p224_p6, %p221_p5 }
  0x35   :  { %229 = shalt.err (!%p226_p7)
}
  0x36   :  { %s230_s7 = scalar_lea.vmem %s46_s24, 256  ;;  %p235_p9 = scmp.lt.s32.totalorder %s46_s24, %s46_s24 }
  0x37   :  { %p231_p8 = scmp.ne.s32.totalorder %s46_s24, %s230_s7  ;;  %p236_p10 = scmp.lt.s32.totalorder %s230_s7, %s230_s7 }
  0x39   :  { %p237_p11 = por %p236_p10, %p235_p9 }
  0x3b   :  { %p238_p12 = pnand %p237_p11, %p231_p8 }
  0x3d   :  { %241 = shalt.err (!%p238_p12)
}
  0x3e   :  { %51 = dma.hbm_to_vmem [thread:$0]  %s393_s3, 256, %s46_s24, [#allocation10], %s275_s10, %s275_s10, %s276_s11  }
  0x3f   :  { %266 = dma.done.wait [#allocation7], 256  }
  0x40   :  { %267 = vsyncadd [#allocation7], 4294967040 }
  0x41   :  { %268 = dma.done.wait [#allocation10], 512  }
  0x42   :  { %269 = vsyncadd [#allocation10], 4294966784  ;;  %vm65_vm0 = vcmask 253952   ;;  %v278_v0 = vmov 0.0   ;;  %s153_s0 = sld [smem:[#allocation5 + $0x3]]  ;;  %s154_s8 = sld [smem:[#allocation5 + $0x2]] }
  0x43   :  { %67 = vst.msk [vmem:[#allocation3] sm:$0x1] %vm65_vm0, %v278_v0  ;;  %66 = vst.msk [vmem:[#allocation2] sm:$0x1] %vm65_vm0, %v278_v0  ;;  %vm103_vm1 = vcmask 261120   ;;  %v72_v1 = vld [vmem:[#allocation11] sm:$0xff] }
  0x44   :  { %v73_v2 = vld [vmem:[#allocation11 + $0x8] sm:$0xff]  ;;  %v68_v3 = vld [vmem:[#allocation6] sm:$0xff]  ;;  %v117_v4 = vsel %vm103_vm1, %v72_v1, 0.0  ;;  %v70_v7 = vld [vmem:[#allocation9] sm:$0xff]  ;;  %s155_s3 = sld [smem:[#allocation5 + $0x1]]  ;;  %s92_s9 = sld [smem:[#allocation5]] }
  0x45   :  { %v118_v5 = vsel %vm103_vm1, %v73_v2, 0.0  ;;  %v69_v6 = vld [vmem:[#allocation6 + $0x8] sm:$0xff]  ;;  %v71_v9 = vld [vmem:[#allocation9 + $0x8] sm:$0xff]  ;;  %v74_v10 = vsub.f32 %v68_v3, %v70_v7  ;;  %s279_s10 = smov [#allocation12]  }
  0x46   :  { %v119_v8 = vadd.f32 %v118_v5, %v117_v4  ;;  %v75_v11 = vsub.f32 %v69_v6, %v71_v9  ;;  %s143_s11 = sshll.u32 %s279_s10, 4  ;;  %s144_s11 = int_to_ptr.vmem [resolvable:$true] %s143_s11 }
  0x47   :  { %v76_v14 = vand.u32 2147483647, %v74_v10  ;;  %s242_s12 = scalar_lea.vmem %s144_s11, 16  ;;  %s246_s13 = scalar_lea.vmem %s144_s11, 32 }
  0x48   :  { %v80_v12 = vstv %s153_s0  ;;  %v120_v13 = vrot.slane %v119_v8, 4  ;;  %v77_v15 = vand.u32 2147483647, %v75_v11  ;;  %v83_v16 = vstv %s154_s8  ;;  %p243_p13 = scmp.ne.s32.totalorder %s144_s11, %s242_s12  ;;  %p247_p0 = scmp.lt.s32.totalorder %s144_s11, %s144_s11 }
  0x49   :  { %v81_v18 = vmul.f32 %v80_v12, %v76_v14  ;;  %p248_p1 = scmp.lt.s32.totalorder %s246_s13, %s242_s12 }
  0x4a   :  { %v121_v17 = vadd.f32 %v120_v13, %v119_v8  ;;  %v82_v19 = vmul.f32 %v80_v12, %v77_v15  ;;  %v89_v23 = vstv %s155_s3  ;;  %v116_v29 = vld [vmem:[#allocation3] sm:$0x1]  ;;  %v95_v31 = vstv %s92_s9  ;;  %v100_v52 = vld [vmem:[#allocation2] sm:$0x1] }
  0x4b   :  { %v84_v21 = vadd.f32 %v83_v16, %v81_v18  ;;  %p249_p2 = por %p248_p1, %p247_p0 }
  0x4c   :  { %v122_v20 = vrot.slane %v121_v17, 2  ;;  %v85_v22 = vadd.f32 %v83_v16, %v82_v19 }
  0x4d   :  { %v87_v25 = vmul.f32 %v84_v21, %v76_v14  ;;  %p250_p3 = pnand %p249_p2, %p243_p13 }
  0x4e   :  { %v123_v24 = vadd.f32 %v122_v20, %v121_v17  ;;  %v88_v26 = vmul.f32 %v85_v22, %v77_v15 }
  0x4f   :  { %v90_v28 = vadd.f32 %v89_v23, %v87_v25 }
  0x50   :  { %v124_v27 = vrot.slane %v123_v24, 1  ;;  %v91_v30 = vadd.f32 %v89_v23, %v88_v26 }
  0x51   :  { %v93_v33 = vmul.f32 %v90_v28, %v76_v14 }
  0x52   :  { %v125_v32 = vadd.f32 %v124_v27, %v123_v24  ;;  %v94_v34 = vmul.f32 %v91_v30, %v77_v15 }
  0x53   :  { %v96_v36 = vadd.f32 %v95_v31, %v93_v33 }
  0x54   :  { %v126_v35 = vadd.f32 %v125_v32, %v116_v29  ;;  %v97_v37 = vadd.f32 %v95_v31, %v94_v34 }
  0x55   :  { %v98_v38 = vmul.f32 %v96_v36, %v76_v14 }
  0x56   :  { %127 = vst.msk [vmem:[#allocation3] sm:$0x1] %vm65_vm0, %v126_v35  ;;  %v99_v39 = vmul.f32 %v97_v37, %v77_v15 }
  0x57   :  { %v101_v40 = vmul.f32 %v98_v38, %v72_v1 }
  0x58   :  { %v102_v41 = vmul.f32 %v99_v39, %v73_v2 }
  0x59   :  { %v104_v42 = vsel %vm103_vm1, %v101_v40, 0.0 }
  0x5a   :  { %v105_v43 = vsel %vm103_vm1, %v102_v41, 0.0 }
  0x5b   :  { %v106_v44 = vadd.f32 %v105_v43, %v104_v42 }
  0x5d   :  { %v107_v45 = vrot.slane %v106_v44, 4  ;;  %v132_v47 = vld [vmem:[#allocation3] sm:$0x1] }
  0x5e   :  { %v133_v49 = vmax.f32 %v132_v47, 1.0 }
  0x5f   :  { %v108_v46 = vadd.f32 %v107_v45, %v106_v44 }
  0x60   :  { %164 = vrcp.f32 %v133_v49 }
  0x61   :  { %v109_v48 = vrot.slane %v108_v46, 2 }
  0x63   :  { %v110_v50 = vadd.f32 %v109_v48, %v108_v46 }
  0x65   :  { %v111_v51 = vrot.slane %v110_v50, 1 }
  0x67   :  { %v112_v53 = vadd.f32 %v111_v51, %v110_v50 }
  0x69   :  { %v113_v54 = vadd.f32 %v112_v53, %v100_v52 }
  0x6a   :  { %v165_v55 = vpop.eup %164 }
  0x6b   :  { %115 = vst.msk [vmem:[#allocation2] sm:$0x1] %vm65_vm0, %v113_v54 }
  0x72   :  { %v131_v56 = vld [vmem:[#allocation2] sm:$0x1] }
  0x73   :  { %v135_v57 = vmul.f32 %v165_v55, %v131_v56 }
  0x75   :  { %136 = vst.msk [vmem:[#allocation12] sm:$0x1] %vm65_vm0, %v135_v57 }
  0x76   :  { %253 = shalt.err (!%p250_p3)
}
  0x77   :  { %s254_s16 = scalar_lea.hbm %s394_s4, 16 }
  0x78   :  { %p255_p4 = scmp.ne.s32.totalorder %s394_s4, %s254_s16  ;;  %p258_p5 = scmp.lt.u32.totalorder %s254_s16, %s394_s4 }
  0x7a   :  { %p260_p6 = pnand %p258_p5, %p255_p4 }
  0x7c   :  { %263 = shalt.err (!%p260_p6)
}
  0x7d   :  { %146 = dma.vmem_to_hbm [thread:$0]  %s144_s11, 16, %s394_s4, [#allocation8]  }
  0x7e   :  { %270 = dma.done.wait [#allocation8], 16  }
  0x7f   :  { %271 = vsyncadd [#allocation8], 4294967280 }
  0x80   :  { %150 = vsyncpa [#allocation7], 1 }
  0x81   :  { %151 = vsyncpa [#allocation10], 1 }
  0x82   :  { %152 = vsyncpa [#allocation8], 1 }

</bundles_post_ra>
